<compile_context>
chip_gen: v6e
topology: v6e:2x2x1
jax: 0.10.0
libtpu: 0.0.40
codegen_flags: <defaults>
</compile_context>

<pallas_src>
import functools

import jax
import jax.numpy as jnp
from jax.experimental import pallas as pl
from jax.experimental.pallas import tpu as pltpu


def _round_up(x, m):
    return (x + m - 1) // m * m


def _cdiv(a, b):
    return -(-a // b)


def _mlp_kernel(x_ref, w1_ref, b1_ref, w2_ref, b2_ref, w3_ref, b3_ref, out_ref):
    # Layer 1: Linear + ReLU.  x arrives as f32 from HBM; cast to bf16 on-chip
    # so the MXU sees bf16 operands while accumulating in f32.
    x = x_ref[...].astype(jnp.bfloat16)
    h1 = jnp.dot(x, w1_ref[...], preferred_element_type=jnp.float32)
    h1 = jnp.maximum(h1 + b1_ref[...], 0.0).astype(jnp.bfloat16)   # bf16 at ReLU

    # Layer 2: Linear + ReLU.
    h2 = jnp.dot(h1, w2_ref[...], preferred_element_type=jnp.float32)
    h2 = jnp.maximum(h2 + b2_ref[...], 0.0).astype(jnp.bfloat16)

    # Layer 3: Linear (acs_scale / acs_bias already folded into w3 / b3).
    acs = jnp.dot(h2, w3_ref[...], preferred_element_type=jnp.float32)
    # Output stays f32; switch out_shape to bf16 if the consumer tolerates it
    # (halves the lane-padded writeback).
    out_ref[...] = (acs + b3_ref[...]).astype(out_ref.dtype)


def prepare_params(params, acs_scale=1.0, acs_bias=0.0):
    """One-time parameter prep: fold output affine into layer 3, pad every
    feature dim to a multiple of 128 lanes, cast weights to bf16 (biases f32).

    Returns (prepared_params_dict, acs_dim)."""
    w1, b1 = params["w1"], params["b1"]
    w2, b2 = params["w2"], params["b2"]
    w3, b3 = params["w3"], params["b3"]
    obs_dim, h1 = w1.shape
    h2 = w2.shape[1]
    acs_dim = w3.shape[1]

    # out_activation is Identity => folding scale/bias into layer 3 is exact
    # (the w3*scale product is done in f32 before the bf16 cast).
    w3 = w3.astype(jnp.float32) * acs_scale
    b3 = b3.astype(jnp.float32) * acs_scale + acs_bias

    LANE = 128
    obs_p = _round_up(obs_dim, LANE)
    h1_p = _round_up(h1, LANE)
    h2_p = _round_up(h2, LANE)
    acs_p = _round_up(acs_dim, LANE)

    def pad2(a, rows, cols):
        return jnp.pad(a, ((0, rows - a.shape[0]), (0, cols - a.shape[1])))

    prepared = {
        "w1": pad2(w1.astype(jnp.float32), obs_p, h1_p).astype(jnp.bfloat16),
        "w2": pad2(w2.astype(jnp.float32), h1_p, h2_p).astype(jnp.bfloat16),
        "w3": pad2(w3, h2_p, acs_p).astype(jnp.bfloat16),
        "b1": jnp.pad(b1.astype(jnp.float32), (0, h1_p - h1)).reshape(1, h1_p),
        "b2": jnp.pad(b2.astype(jnp.float32), (0, h2_p - h2)).reshape(1, h2_p),
        "b3": jnp.pad(b3, (0, acs_p - acs_dim)).reshape(1, acs_p),
    }
    return prepared, acs_dim


def _invariant_spec(shape):
    """BlockSpec for a grid-invariant operand: same block every grid step,
    single VMEM buffer (never re-fetched, so double buffering wastes VMEM)."""
    if hasattr(pl, "Buffered"):
        try:
            return pl.BlockSpec(shape, lambda i: (0, 0),
                                pipeline_mode=pl.Buffered(1))
        except TypeError:   # older jax without the pipeline_mode kwarg
            pass
    return pl.BlockSpec(shape, lambda i: (0, 0))


def deterministic_mlp_forward(obs, prepared, acs_dim, tile_b=512):
    """Forward pass of DeterministicMLP.

    obs: (B, ...) array, flattened from dim 1 (torch.flatten(obs, 1)).
    prepared: output of prepare_params() (padded bf16 weights, f32 biases).
    acs_dim: unpadded action dim (static Python int).
    """
    B = obs.shape[0]
    x = obs.reshape(B, -1).astype(jnp.float32)          # glue: flatten in JAX
    obs_dim = x.shape[1]

    w1, b1 = prepared["w1"], prepared["b1"]
    w2, b2 = prepared["w2"], prepared["b2"]
    w3, b3 = prepared["w3"], prepared["b3"]
    obs_p, h1_p = w1.shape
    h2_p = w2.shape[1]
    acs_p = w3.shape[1]
    assert obs_p == _round_up(obs_dim, 128), "obs_dim mismatch with prepared params"

    # Batch tile: multiple of 16 (bf16 sublane packing of the on-chip cast),
    # >= 2 grid steps when B > 16 so both v7x TensorCores get work via the
    # "parallel" axis, and no bigger than needed so batch padding stays small.
    b16 = _round_up(max(B, 1), 16)
    tb = min(max(_round_up(tile_b, 16), 16), b16)
    if B > 16:
        tb = min(tb, _round_up(_cdiv(b16, 2), 16))
    b_p = _round_up(B, tb)

    if b_p != B or obs_p != obs_dim:
        x = jnp.pad(x, ((0, b_p - B), (0, obs_p - obs_dim)))

    # Explicit scoped-VMEM budget (v5e default is only 16 MiB): x / out tiles
    # double-buffered, weights single-buffered, hidden temporaries in bf16.
    vmem_bytes = (
        2 * tb * obs_p * 4                                   # x tile, f32, 2 bufs
        + 2 * tb * acs_p * 4                                 # out tile, f32, 2 bufs
        + (obs_p * h1_p + h1_p * h2_p + h2_p * acs_p) * 2    # bf16 weights, 1 buf
        + (h1_p + h2_p + acs_p) * 4                          # biases
        + tb * (h1_p + h2_p) * 6)                            # hidden temps (bf16+f32)
    vmem_limit = int(max(32 << 20, min(64 << 20, 2 * vmem_bytes)))
    # TODO(synk): if padded bf16 weights ever exceed ~50 MiB (v7x has 64 MiB
    # VMEM/TC), add a K-axis reduction grid over obs_p instead of keeping all
    # weights VMEM-resident.

    grid = (b_p // tb,)
    out = pl.pallas_call(
        _mlp_kernel,
        out_shape=jax.ShapeDtypeStruct((b_p, acs_p), jnp.float32),
        grid=grid,
        in_specs=[
            pl.BlockSpec((tb, obs_p), lambda i: (i, 0)),     # x: tiled over batch
            _invariant_spec((obs_p, h1_p)),                  # weights: VMEM-resident
            _invariant_spec((1, h1_p)),
            _invariant_spec((h1_p, h2_p)),
            _invariant_spec((1, h2_p)),
            _invariant_spec((h2_p, acs_p)),
            _invariant_spec((1, acs_p)),
        ],
        out_specs=pl.BlockSpec((tb, acs_p), lambda i: (i, 0)),
        compiler_params=pltpu.CompilerParams(
            dimension_semantics=("parallel",),
            vmem_limit_bytes=vmem_limit),
    )(x, w1, b1, w2, b2, w3, b3)

    # Slice off batch / lane padding in the glue (lane-dense store in-kernel).
    return out[:B, :acs_dim]


def init_params(key, obs_dim, acs_dim, hidden1, hidden2):
    """Init mimicking torch.nn.Linear default (U[-1/sqrt(fan_in), +1/sqrt(fan_in)])."""
    def linear_init(k, fan_in, fan_out):
        kw, kb = jax.random.split(k)
        bound = 1.0 / jnp.sqrt(fan_in)
        w = jax.random.uniform(kw, (fan_in, fan_out), jnp.float32, -bound, bound)
        b = jax.random.uniform(kb, (fan_out,), jnp.float32, -bound, bound)
        return w, b

    k1, k2, k3 = jax.random.split(key, 3)
    w1, b1 = linear_init(k1, obs_dim, hidden1)
    w2, b2 = linear_init(k2, hidden1, hidden2)
    w3, b3 = linear_init(k3, hidden2, acs_dim)
    return {"w1": w1, "b1": b1, "w2": w2, "b2": b2, "w3": w3, "b3": b3}


def _reference_forward(obs, params, acs_scale, acs_bias):
    x = obs.reshape(obs.shape[0], -1).astype(jnp.float32)
    h = jax.nn.relu(x @ params["w1"] + params["b1"])
    h = jax.nn.relu(h @ params["w2"] + params["b2"])
    acs = h @ params["w3"] + params["b3"]
    return acs * acs_scale + acs_bias


if __name__ == "__main__":
    # Small shapes: obs is NCHW (2, 4, 16, 16) -> flattened obs_dim = 1024.
    B, C, H, W = 2, 4, 16, 16
    obs_dim = C * H * W
    hidden1, hidden2 = 128, 128
    acs_dim = 8
    acs_scale, acs_bias = 2.0, 0.5

    key = jax.random.PRNGKey(0)
    k_obs, k_obs2, k_par = jax.random.split(key, 3)
    obs = jax.random.normal(k_obs, (B, C, H, W), jnp.float32)
    params = init_params(k_par, obs_dim, acs_dim, hidden1, hidden2)

    # One-time parameter prep (pad + bf16 cast + acs_scale / acs_bias fold).
    prepared, acs_dim_p = prepare_params(params, acs_scale, acs_bias)

    fwd = jax.jit(functools.partial(deterministic_mlp_forward, acs_dim=acs_dim_p))

    out = jax.block_until_ready(fwd(obs, prepared))
    ref = _reference_forward(obs, params, acs_scale, acs_bias)
    assert out.shape == (B, acs_dim), f"bad shape {out.shape}"
    # bf16 weights/activations with f32 accumulation vs pure-f32 reference.
    assert jnp.allclose(out, ref, atol=3e-2, rtol=3e-2), (
        f"mismatch vs reference, max abs diff = {jnp.max(jnp.abs(out - ref))}")

    # Second batch size (B > 16): exercises batch padding and a multi-step
    # "parallel" grid (>= 2 steps -> both TCs on v7x).
    B2 = 40
    obs2 = jax.random.normal(k_obs2, (B2, C, H, W), jnp.float32)
    out2 = jax.block_until_ready(fwd(obs2, prepared))
    ref2 = _reference_forward(obs2, params, acs_scale, acs_bias)
    assert out2.shape == (B2, acs_dim), f"bad shape {out2.shape}"
    assert jnp.allclose(out2, ref2, atol=3e-2, rtol=3e-2), (
        f"mismatch vs reference (B=40), max abs diff = {jnp.max(jnp.abs(out2 - ref2))}")

    print("KERNEL_OK")
</pallas_src>

<mosaic_0001>
module attributes {stable_mosaic.version = 11 : i64} {
  func.func @_mlp_kernel(%arg0: i32, %arg1: memref<16x1024xf32, #tpu.memory_space<vmem>>, %arg2: memref<1024x128xbf16, #tpu.memory_space<vmem>>, %arg3: memref<1x128xf32, #tpu.memory_space<vmem>>, %arg4: memref<128x128xbf16, #tpu.memory_space<vmem>>, %arg5: memref<1x128xf32, #tpu.memory_space<vmem>>, %arg6: memref<128x128xbf16, #tpu.memory_space<vmem>>, %arg7: memref<1x128xf32, #tpu.memory_space<vmem>>, %arg8: memref<16x128xf32, #tpu.memory_space<vmem>>) attributes {dimension_semantics = [#tpu.dimension_semantics<parallel>], iteration_bounds = array<i64: 1>, scalar_prefetch = 0 : i64, scratch_operands = 0 : i64, tpu.core_type = #tpu.core_type<tc>, window_params = [{transform_indices = @transform_0, window_bounds = array<i64: 16, 1024>}, {pipeline_mode = #tpu.pipeline_mode<synchronous>, transform_indices = @transform_1, window_bounds = array<i64: 1024, 128>}, {pipeline_mode = #tpu.pipeline_mode<synchronous>, transform_indices = @transform_2, window_bounds = array<i64: 1, 128>}, {pipeline_mode = #tpu.pipeline_mode<synchronous>, transform_indices = @transform_3, window_bounds = array<i64: 128, 128>}, {pipeline_mode = #tpu.pipeline_mode<synchronous>, transform_indices = @transform_4, window_bounds = array<i64: 1, 128>}, {pipeline_mode = #tpu.pipeline_mode<synchronous>, transform_indices = @transform_5, window_bounds = array<i64: 128, 128>}, {pipeline_mode = #tpu.pipeline_mode<synchronous>, transform_indices = @transform_6, window_bounds = array<i64: 1, 128>}, {transform_indices = @transform_7, window_bounds = array<i64: 16, 128>}]} {
    %c0 = arith.constant 0 : index
    %c0_0 = arith.constant 0 : index
    %0 = vector.load %arg1[%c0, %c0_0] : memref<16x1024xf32, #tpu.memory_space<vmem>>, vector<16x1024xf32>
    %1 = arith.truncf %0 : vector<16x1024xf32> to vector<16x1024xbf16>
    %c0_1 = arith.constant 0 : index
    %c0_2 = arith.constant 0 : index
    %2 = vector.load %arg2[%c0_1, %c0_2] : memref<1024x128xbf16, #tpu.memory_space<vmem>>, vector<1024x128xbf16>
    %cst = arith.constant dense<0.000000e+00> : vector<16x128xf32>
    %3 = tpu.matmul %1, %2, %cst {dimension_numbers = #tpu.dot_dimension_numbers<[1], [0], [0], [1], [0, 0, 1, 1], [], []>} : vector<16x1024xbf16>, vector<1024x128xbf16>, vector<16x128xf32> -> vector<16x128xf32>
    %c0_3 = arith.constant 0 : index
    %c0_4 = arith.constant 0 : index
    %4 = vector.load %arg3[%c0_3, %c0_4] : memref<1x128xf32, #tpu.memory_space<vmem>>, vector<1x128xf32>
    %5 = vector.broadcast %4 : vector<1x128xf32> to vector<16x128xf32>
    %6 = arith.addf %3, %5 : vector<16x128xf32>
    %cst_5 = arith.constant 0.000000e+00 : f32
    %7 = vector.broadcast %cst_5 : f32 to vector<16x128xf32>
    %8 = arith.maximumf %6, %7 : vector<16x128xf32>
    %9 = arith.truncf %8 : vector<16x128xf32> to vector<16x128xbf16>
    %c0_6 = arith.constant 0 : index
    %c0_7 = arith.constant 0 : index
    %10 = vector.load %arg4[%c0_6, %c0_7] : memref<128x128xbf16, #tpu.memory_space<vmem>>, vector<128x128xbf16>
    %cst_8 = arith.constant dense<0.000000e+00> : vector<16x128xf32>
    %11 = tpu.matmul %9, %10, %cst_8 {dimension_numbers = #tpu.dot_dimension_numbers<[1], [0], [0], [1], [0, 0, 1, 1], [], []>} : vector<16x128xbf16>, vector<128x128xbf16>, vector<16x128xf32> -> vector<16x128xf32>
    %c0_9 = arith.constant 0 : index
    %c0_10 = arith.constant 0 : index
    %12 = vector.load %arg5[%c0_9, %c0_10] : memref<1x128xf32, #tpu.memory_space<vmem>>, vector<1x128xf32>
    %13 = vector.broadcast %12 : vector<1x128xf32> to vector<16x128xf32>
    %14 = arith.addf %11, %13 : vector<16x128xf32>
    %cst_11 = arith.constant 0.000000e+00 : f32
    %15 = vector.broadcast %cst_11 : f32 to vector<16x128xf32>
    %16 = arith.maximumf %14, %15 : vector<16x128xf32>
    %17 = arith.truncf %16 : vector<16x128xf32> to vector<16x128xbf16>
    %c0_12 = arith.constant 0 : index
    %c0_13 = arith.constant 0 : index
    %18 = vector.load %arg6[%c0_12, %c0_13] : memref<128x128xbf16, #tpu.memory_space<vmem>>, vector<128x128xbf16>
    %cst_14 = arith.constant dense<0.000000e+00> : vector<16x128xf32>
    %19 = tpu.matmul %17, %18, %cst_14 {dimension_numbers = #tpu.dot_dimension_numbers<[1], [0], [0], [1], [0, 0, 1, 1], [], []>} : vector<16x128xbf16>, vector<128x128xbf16>, vector<16x128xf32> -> vector<16x128xf32>
    %c0_15 = arith.constant 0 : index
    %c0_16 = arith.constant 0 : index
    %20 = vector.load %arg7[%c0_15, %c0_16] : memref<1x128xf32, #tpu.memory_space<vmem>>, vector<1x128xf32>
    %21 = vector.broadcast %20 : vector<1x128xf32> to vector<16x128xf32>
    %22 = arith.addf %19, %21 : vector<16x128xf32>
    %c0_17 = arith.constant 0 : index
    %c0_18 = arith.constant 0 : index
    %23 = vector.load %arg8[%c0_17, %c0_18] : memref<16x128xf32, #tpu.memory_space<vmem>>, vector<16x128xf32>
    tpu.vector_store %arg8[%c0_17, %c0_18], %22 {strides = array<i32>} : memref<16x128xf32, #tpu.memory_space<vmem>>, vector<16x128xf32>,
    return
  }
  func.func @transform_0(%arg0: i32) -> (i32, i32) {
    %c0_i32 = arith.constant 0 : i32
    %c0_i32_0 = arith.constant 0 : i32
    return %arg0, %c0_i32 : i32, i32
  }
  func.func @transform_1(%arg0: i32) -> (i32, i32) {
    %c0_i32 = arith.constant 0 : i32
    %c0_i32_0 = arith.constant 0 : i32
    %c0_i32_1 = arith.constant 0 : i32
    return %c0_i32, %c0_i32_0 : i32, i32
  }
  func.func @transform_2(%arg0: i32) -> (i32, i32) {
    %c0_i32 = arith.constant 0 : i32
    %c0_i32_0 = arith.constant 0 : i32
    %c0_i32_1 = arith.constant 0 : i32
    return %c0_i32, %c0_i32_0 : i32, i32
  }
  func.func @transform_3(%arg0: i32) -> (i32, i32) {
    %c0_i32 = arith.constant 0 : i32
    %c0_i32_0 = arith.constant 0 : i32
    %c0_i32_1 = arith.constant 0 : i32
    return %c0_i32, %c0_i32_0 : i32, i32
  }
  func.func @transform_4(%arg0: i32) -> (i32, i32) {
    %c0_i32 = arith.constant 0 : i32
    %c0_i32_0 = arith.constant 0 : i32
    %c0_i32_1 = arith.constant 0 : i32
    return %c0_i32, %c0_i32_0 : i32, i32
  }
  func.func @transform_5(%arg0: i32) -> (i32, i32) {
    %c0_i32 = arith.constant 0 : i32
    %c0_i32_0 = arith.constant 0 : i32
    %c0_i32_1 = arith.constant 0 : i32
    return %c0_i32, %c0_i32_0 : i32, i32
  }
  func.func @transform_6(%arg0: i32) -> (i32, i32) {
    %c0_i32 = arith.constant 0 : i32
    %c0_i32_0 = arith.constant 0 : i32
    %c0_i32_1 = arith.constant 0 : i32
    return %c0_i32, %c0_i32_0 : i32, i32
  }
  func.func @transform_7(%arg0: i32) -> (i32, i32) {
    %c0_i32 = arith.constant 0 : i32
    %c0_i32_0 = arith.constant 0 : i32
    return %arg0, %c0_i32 : i32, i32
  }
}

</mosaic_0001>

<bundles_post_ra>
// kernel: deterministic_mlp_forward.1
= control target key start
LH: loop header
LB: loop body
LE: loop exit
PB: predicated region body
PF: predicated region fallthrough
CT: control target
= control target key end

     0   :  { %12 = vsyncpa [#allocation3], 0  ;;  %s1321_s24 = smov [#allocation2]   ;;  %s1498_s0 = inlined_call_operand.vmem [shape: f32[16,1024], index: 0, kind: input, shape index: {}]   ;;  %s1499_s1 = inlined_call_operand.hbm [shape: bf16[1024,128], index: 1, kind: input, shape index: {}]   ;;  %s1500_s2 = inlined_call_operand.vmem [shape: f32[1,128], index: 2, kind: input, shape index: {}]   ;;  %s1501_s3 = inlined_call_operand.vmem [shape: bf16[128,128], index: 3, kind: input, shape index: {}]   ;;  %s1502_s4 = inlined_call_operand.vmem [shape: f32[1,128], index: 4, kind: input, shape index: {}]   ;;  %s1503_s5 = inlined_call_operand.vmem [shape: bf16[128,128], index: 5, kind: input, shape index: {}]   ;;  %s1504_s6 = inlined_call_operand.vmem [shape: f32[1,128], index: 6, kind: input, shape index: {}]   ;;  %s1505_s7 = inlined_call_operand.vmem [shape: f32[16,128], index: 7, kind: output, shape index: {}]  }
   0x1   :  { %s20_s25 = sshll.u32 %s1321_s24, 4  ;;  %s21_s25 = int_to_ptr.vmem [resolvable:$true] %s20_s25 }
   0x2   :  { %s1307_s26 = scalar_lea.vmem %s21_s25, 8192  ;;  %p1312_p1 = scmp.lt.s32.totalorder %s21_s25, %s21_s25 }
   0x3   :  { %p1308_p0 = scmp.ne.s32.totalorder %s21_s25, %s1307_s26  ;;  %p1313_p2 = scmp.lt.s32.totalorder %s1307_s26, %s1307_s26 }
   0x5   :  { %p1314_p3 = por %p1313_p2, %p1312_p1 }
   0x7   :  { %p1315_p4 = pnand %p1314_p3, %p1308_p0 }
   0x9   :  { %1318 = shalt.err (!%p1315_p4)
}
   0xa   :  { %s1322_s27 = smov 64   ;;  %s1323_s28 = smov 4  }
   0xb   :  { %26 = dma.hbm_to_vmem [thread:$0]  %s1499_s1, 8192, %s21_s25, [#allocation3], %s1322_s27, %s1322_s27, %s1323_s28  }
   0xc   :  { %1319 = dma.done.wait [#allocation3], 8192  }
   0xd   :  { %1320 = vsyncadd [#allocation3], 4294959104  ;;  %v1219_v0 = vld [vmem:[#allocation2 + $0x78] sm:$0xff]   ;;  %v1223_v4 = vld [vmem:[#allocation2 + $0x70] sm:$0xff]   ;;  %vm1325_vm0 = vmmov 0  }
   0xe   :  { %v1220_v1 = vld [vmem:[#allocation2 + $0xf8] sm:$0xff]   ;;  %1068 = vmatprep.subr.bf16.mxu0 %v1219_v0  ;;  %v1224_v5 = vld [vmem:[#allocation2 + $0xf0] sm:$0xff]   ;;  %v1227_v8 = vld [vmem:[#allocation2 + $0x68] sm:$0xff]  }
   0xf   :  { %v1221_v2 = vld [vmem:[#allocation2 + $0x38] sm:$0xff]   ;;  %1090 = vmatprep.subr.bf16.mxu1 %v1220_v1  ;;  %v1225_v6 = vld [vmem:[#allocation2 + $0x30] sm:$0xff]   ;;  %v1228_v9 = vld [vmem:[#allocation2 + $0xe8] sm:$0xff]  }
  0x10   :  { %v1222_v3 = vld [vmem:[#allocation2 + $0xb8] sm:$0xff]   ;;  %1069 = vmatpush3.bf16.msra.mxu0 %v1221_v2  ;;  %v1226_v7 = vld [vmem:[#allocation2 + $0xb0] sm:$0xff]   ;;  %v1229_v10 = vld [vmem:[#allocation2 + $0x28] sm:$0xff]  }
  0x11   :  { %1091 = vmatpush3.bf16.msra.mxu1 %v1222_v3  ;;  %1070 = vmatprep.subr.bf16.mxu0 %v1223_v4  ;;  %v1230_v11 = vld [vmem:[#allocation2 + $0xa8] sm:$0xff]   ;;  %v1231_v12 = vld [vmem:[#allocation2 + $0x60] sm:$0xff]   ;;  %v1235_v16 = vld [vmem:[#allocation2 + $0x58] sm:$0xff]  }
  0x12   :  { %1092 = vmatprep.subr.bf16.mxu1 %v1224_v5  ;;  %v1232_v13 = vld [vmem:[#allocation2 + $0xe0] sm:$0xff]   ;;  %v1236_v17 = vld [vmem:[#allocation2 + $0xd8] sm:$0xff]   ;;  %v1239_v20 = vld [vmem:[#allocation2 + $0x50] sm:$0xff]  }
  0x13   :  { %v1233_v14 = vld [vmem:[#allocation2 + $0x20] sm:$0xff]   ;;  %v1237_v18 = vld [vmem:[#allocation2 + $0x18] sm:$0xff]   ;;  %v1240_v21 = vld [vmem:[#allocation2 + $0xd0] sm:$0xff]  }
  0x14   :  { %1071 = vmatpush3.bf16.msra.mxu0 %v1225_v6  ;;  %v1234_v15 = vld [vmem:[#allocation2 + $0xa0] sm:$0xff]   ;;  %v1238_v19 = vld [vmem:[#allocation2 + $0x98] sm:$0xff]   ;;  %v1241_v22 = vld [vmem:[#allocation2 + $0x10] sm:$0xff]  }
  0x15   :  { %1093 = vmatpush3.bf16.msra.mxu1 %v1226_v7  ;;  %1072 = vmatprep.subr.bf16.mxu0 %v1227_v8  ;;  %v1242_v23 = vld [vmem:[#allocation2 + $0x90] sm:$0xff]   ;;  %v1243_v24 = vld [vmem:[#allocation2 + $0x48] sm:$0xff]   ;;  %v1247_v28 = vld [vmem:[#allocation2 + $0x40] sm:$0xff]  }
  0x16   :  { %1094 = vmatprep.subr.bf16.mxu1 %v1228_v9  ;;  %v1244_v25 = vld [vmem:[#allocation2 + $0xc8] sm:$0xff]   ;;  %v1248_v29 = vld [vmem:[#allocation2 + $0xc0] sm:$0xff]   ;;  %v44_v34 = vld [vmem:[%s1498_s0 + $0x18] sm:$0xff] }
  0x17   :  { %v1245_v26 = vld [vmem:[#allocation2 + $0x8] sm:$0xff]   ;;  %v1249_v30 = vld [vmem:[#allocation2] sm:$0xff]   ;;  %v52_v36 = vld [vmem:[%s1498_s0 + $0x58] sm:$0xff] }
  0x18   :  { %1073 = vmatpush3.bf16.msra.mxu0 %v1229_v10  ;;  %v1246_v27 = vld [vmem:[#allocation2 + $0x88] sm:$0xff]   ;;  %v1250_v31 = vld [vmem:[#allocation2 + $0x80] sm:$0xff]   ;;  %v60_v39 = vpack.c.bf16 %v52_v36, %v44_v34  ;;  %v43_v41 = vld [vmem:[%s1498_s0 + $0x10] sm:$0xff] }
  0x19   :  { %1095 = vmatpush3.bf16.msra.mxu1 %v1230_v11  ;;  %1074 = vmatprep.subr.bf16.mxu0 %v1231_v12  ;;  %v42_v32 = vld [vmem:[%s1498_s0 + $0x8] sm:$0xff]  ;;  %v41_v37 = vld [vmem:[%s1498_s0] sm:$0xff]  ;;  %v51_v42 = vld [vmem:[%s1498_s0 + $0x50] sm:$0xff] }
  0x1a   :  { %1096 = vmatprep.subr.bf16.mxu1 %v1232_v13  ;;  %v50_v33 = vld [vmem:[%s1498_s0 + $0x48] sm:$0xff]  ;;  %v49_v38 = vld [vmem:[%s1498_s0 + $0x40] sm:$0xff]  ;;  %v59_v43 = vpack.c.bf16 %v51_v42, %v43_v41  ;;  %v1251_v44 = vld [vmem:[#allocation2 + $0x178] sm:$0xff]   ;;  %657 = vmatprep.mubr.bf16.mxu1 %v60_v39 }
  0x1b   :  { %v58_v35 = vpack.c.bf16 %v50_v33, %v42_v32  ;;  %v57_v40 = vpack.c.bf16 %v49_v38, %v41_v37  ;;  %v1252_v45 = vld [vmem:[#allocation2 + $0x1f8] sm:$0xff]   ;;  %v1255_v48 = vld [vmem:[#allocation2 + $0x170] sm:$0xff]   ;;  %v1259_v52 = vld [vmem:[#allocation2 + $0x168] sm:$0xff]  }
  0x1c   :  { %1075 = vmatpush3.bf16.msra.mxu0 %v1233_v14  ;;  %v1253_v46 = vld [vmem:[#allocation2 + $0x138] sm:$0xff]   ;;  %v1256_v49 = vld [vmem:[#allocation2 + $0x1f0] sm:$0xff]   ;;  %v1260_v53 = vld [vmem:[#allocation2 + $0x1e8] sm:$0xff]  }
  0x1d   :  { %1097 = vmatpush3.bf16.msra.mxu1 %v1234_v15  ;;  %1076 = vmatprep.subr.bf16.mxu0 %v1235_v16  ;;  %v1254_v47 = vld [vmem:[#allocation2 + $0x1b8] sm:$0xff]   ;;  %v1257_v50 = vld [vmem:[#allocation2 + $0x130] sm:$0xff]   ;;  %v1261_v54 = vld [vmem:[#allocation2 + $0x128] sm:$0xff]  }
  0x1e   :  { %1098 = vmatprep.subr.bf16.mxu1 %v1236_v17  ;;  %616 = vmatprep.mubr.bf16.mxu0 %v58_v35  ;;  %v1258_v51 = vld [vmem:[#allocation2 + $0x1b0] sm:$0xff]   ;;  %v1262_v55 = vld [vmem:[#allocation2 + $0x1a8] sm:$0xff]   ;;  %v1263_v56 = vld [vmem:[#allocation2 + $0x160] sm:$0xff]  }
  0x1f   :  { %v1264_v57 = vld [vmem:[#allocation2 + $0x1e0] sm:$0xff]   ;;  %v1267_v60 = vld [vmem:[#allocation2 + $0x158] sm:$0xff]   ;;  %v1271_v0 = vld [vmem:[#allocation2 + $0x150] sm:$0xff]  }
  0x20   :  { %1077 = vmatpush3.bf16.msra.mxu0 %v1237_v18  ;;  %v1265_v58 = vld [vmem:[#allocation2 + $0x120] sm:$0xff]   ;;  %v1268_v61 = vld [vmem:[#allocation2 + $0x1d8] sm:$0xff]   ;;  %v1272_v1 = vld [vmem:[#allocation2 + $0x1d0] sm:$0xff]  }
  0x21   :  { %1099 = vmatpush3.bf16.msra.mxu1 %v1238_v19  ;;  %1078 = vmatprep.subr.bf16.mxu0 %v1239_v20  ;;  %v1266_v59 = vld [vmem:[#allocation2 + $0x1a0] sm:$0xff]   ;;  %v1269_v62 = vld [vmem:[#allocation2 + $0x118] sm:$0xff]   ;;  %v1273_v2 = vld [vmem:[#allocation2 + $0x110] sm:$0xff]  }
  0x22   :  { %1100 = vmatprep.subr.bf16.mxu1 %v1240_v21  ;;  %v1270_v63 = vld [vmem:[#allocation2 + $0x198] sm:$0xff]   ;;  %v1274_v3 = vld [vmem:[#allocation2 + $0x190] sm:$0xff]   ;;  %v1275_v4 = vld [vmem:[#allocation2 + $0x148] sm:$0xff]  }
  0x23   :  { %v1276_v5 = vld [vmem:[#allocation2 + $0x1c8] sm:$0xff]   ;;  %v1279_v8 = vld [vmem:[#allocation2 + $0x140] sm:$0xff]   ;;  %v48_v14 = vld [vmem:[%s1498_s0 + $0x38] sm:$0xff] }
  0x24   :  { %1079 = vmatpush3.bf16.msra.mxu0 %v1241_v22  ;;  %v1277_v6 = vld [vmem:[#allocation2 + $0x108] sm:$0xff]   ;;  %v1280_v9 = vld [vmem:[#allocation2 + $0x1c0] sm:$0xff]   ;;  %v56_v15 = vld [vmem:[%s1498_s0 + $0x78] sm:$0xff] }
  0x25   :  { %1101 = vmatpush3.bf16.msra.mxu1 %v1242_v23  ;;  %1080 = vmatprep.subr.bf16.mxu0 %v1243_v24  ;;  %v1278_v7 = vld [vmem:[#allocation2 + $0x188] sm:$0xff]   ;;  %v1281_v10 = vld [vmem:[#allocation2 + $0x100] sm:$0xff]   ;;  %v64_v17 = vpack.c.bf16 %v56_v15, %v48_v14  ;;  %v47_v20 = vld [vmem:[%s1498_s0 + $0x30] sm:$0xff] }
  0x26   :  { %1102 = vmatprep.subr.bf16.mxu1 %v1244_v25  ;;  %v1282_v11 = vld [vmem:[#allocation2 + $0x180] sm:$0xff]   ;;  %v46_v12 = vld [vmem:[%s1498_s0 + $0x28] sm:$0xff]  ;;  %v55_v22 = vld [vmem:[%s1498_s0 + $0x70] sm:$0xff]  ;;  %v1324_v25 = vmov 0.0  }
  0x27   :  { %v54_v13 = vld [vmem:[%s1498_s0 + $0x68] sm:$0xff]  ;;  %v45_v18 = vld [vmem:[%s1498_s0 + $0x20] sm:$0xff]  ;;  %v63_v23 = vpack.c.bf16 %v55_v22, %v47_v20  ;;  %v1283_v24 = vld [vmem:[%s1501_s3 + $0x38] sm:$0xff]  }
  0x28   :  { %1081 = vmatpush3.bf16.msra.mxu0 %v1245_v26  ;;  %v62_v16 = vpack.c.bf16 %v54_v13, %v46_v12  ;;  %v53_v19 = vld [vmem:[%s1498_s0 + $0x60] sm:$0xff]  ;;  %v1284_v26 = vld [vmem:[%s1501_s3 + $0x30] sm:$0xff]   ;;  %v1291_v33 = vld [vmem:[%s1503_s5 + $0x38] sm:$0xff]  }
  0x29   :  { %1103 = vmatpush3.bf16.msra.mxu1 %v1246_v27  ;;  %1082 = vmatprep.subr.bf16.mxu0 %v1247_v28  ;;  %v61_v21 = vpack.c.bf16 %v53_v19, %v45_v18  ;;  %v1285_v27 = vld [vmem:[%s1501_s3 + $0x28] sm:$0xff]   ;;  %v1286_v28 = vld [vmem:[%s1501_s3 + $0x20] sm:$0xff]   ;;  %v1292_v34 = vld [vmem:[%s1503_s5 + $0x30] sm:$0xff]  }
  0x2a   :  { %1104 = vmatprep.subr.bf16.mxu1 %v1248_v29  ;;  %v1287_v29 = vld [vmem:[%s1501_s3 + $0x18] sm:$0xff]   ;;  %v1290_v32 = vld [vmem:[%s1501_s3] sm:$0xff]   ;;  %v1293_v35 = vld [vmem:[%s1503_s5 + $0x28] sm:$0xff]  }
  0x2b   :  { %v1294_v36 = vld [vmem:[%s1503_s5 + $0x20] sm:$0xff]   ;;  %v1295_v37 = vld [vmem:[%s1503_s5 + $0x18] sm:$0xff]  }
  0x2c   :  { %1083 = vmatpush3.bf16.msra.mxu0 %v1249_v30  ;;  %v1288_v30 = vld [vmem:[%s1501_s3 + $0x10] sm:$0xff]   ;;  %v1298_v12 = vld [vmem:[%s1503_s5] sm:$0xff]  }
  0x2d   :  { %1105 = vmatpush3.bf16.msra.mxu1 %v1250_v31  ;;  %1112 = vmatprep.subr.bf16.mxu0 %v1251_v44  ;;  %v1289_v31 = vld [vmem:[%s1501_s3 + $0x8] sm:$0xff]   ;;  %v1050_v13 = vld [vmem:[%s1502_s4] ss:$0 sm:$0xff] }
  0x2e   :  { %1134 = vmatprep.subr.bf16.mxu1 %v1252_v45  ;;  %v985_v45 = vld [vmem:[%s1500_s2] ss:$0 sm:$0xff] }
  0x2f   :  { %617 = vmatmul.mubr.bf16.vlgmr.msra.gmra.mxu0 %v57_v40 }
  0x30   :  { %658 = vmatmul.mubr.bf16.vlgmr.msra.gmra.mxu1 %v59_v43  ;;  %1113 = vmatpush3.bf16.msra.mxu0 %v1253_v46 }
  0x31   :  { %1135 = vmatpush3.bf16.msra.mxu1 %v1254_v47  ;;  %1114 = vmatprep.subr.bf16.mxu0 %v1255_v48 }
  0x32   :  { %1136 = vmatprep.subr.bf16.mxu1 %v1256_v49  ;;  %698 = vmatprep.mubr.bf16.mxu0 %v62_v16 }
  0x33   :  { %739 = vmatprep.mubr.bf16.mxu1 %v64_v17 }
  0x34   :  { %1115 = vmatpush3.bf16.msra.mxu0 %v1257_v50 }
  0x35   :  { %1137 = vmatpush3.bf16.msra.mxu1 %v1258_v51  ;;  %1116 = vmatprep.subr.bf16.mxu0 %v1259_v52 }
  0x36   :  { %1138 = vmatprep.subr.bf16.mxu1 %v1260_v53 }
  0x38   :  { %1117 = vmatpush3.bf16.msra.mxu0 %v1261_v54 }
  0x39   :  { %1139 = vmatpush3.bf16.msra.mxu1 %v1262_v55  ;;  %1118 = vmatprep.subr.bf16.mxu0 %v1263_v56 }
  0x3a   :  { %1140 = vmatprep.subr.bf16.mxu1 %v1264_v57 }
  0x3c   :  { %1119 = vmatpush3.bf16.msra.mxu0 %v1265_v58 }
  0x3d   :  { %1141 = vmatpush3.bf16.msra.mxu1 %v1266_v59  ;;  %1120 = vmatprep.subr.bf16.mxu0 %v1267_v60 }
  0x3e   :  { %1142 = vmatprep.subr.bf16.mxu1 %v1268_v61 }
  0x40   :  { %1121 = vmatpush3.bf16.msra.mxu0 %v1269_v62 }
  0x41   :  { %1143 = vmatpush3.bf16.msra.mxu1 %v1270_v63  ;;  %1122 = vmatprep.subr.bf16.mxu0 %v1271_v0 }
  0x42   :  { %1144 = vmatprep.subr.bf16.mxu1 %v1272_v1 }
  0x44   :  { %1123 = vmatpush3.bf16.msra.mxu0 %v1273_v2 }
  0x45   :  { %1145 = vmatpush3.bf16.msra.mxu1 %v1274_v3  ;;  %1124 = vmatprep.subr.bf16.mxu0 %v1275_v4 }
  0x46   :  { %1146 = vmatprep.subr.bf16.mxu1 %v1276_v5 }
  0x48   :  { %1125 = vmatpush3.bf16.msra.mxu0 %v1277_v6 }
  0x49   :  { %1147 = vmatpush3.bf16.msra.mxu1 %v1278_v7  ;;  %1126 = vmatprep.subr.bf16.mxu0 %v1279_v8 }
  0x4a   :  { %1148 = vmatprep.subr.bf16.mxu1 %v1280_v9 }
  0x4c   :  { %1127 = vmatpush3.bf16.msra.mxu0 %v1281_v10  ;;  %v1296_v10 = vld [vmem:[%s1503_s5 + $0x10] sm:$0xff]  }
  0x4d   :  { %1149 = vmatpush3.bf16.msra.mxu1 %v1282_v11  ;;  %1174 = vmatprep.subr.bf16.mxu0 %v1324_v25  ;;  %v1297_v11 = vld [vmem:[%s1503_s5 + $0x8] sm:$0xff]  }
  0x4e   :  { %1194 = vmatprep.subr.bf16.mxu1 %v1324_v25 }
  0x4f   :  { %699 = vmatmul.mubr.bf16.vlgmr.msra.gmra.mxu0 %v61_v21 }
  0x50   :  { %740 = vmatmul.mubr.bf16.vlgmr.msra.gmra.mxu1 %v63_v23  ;;  %1175 = vmatpush3.bf16.msra.mxu0 %v1283_v24  ;;  %v1059_v23 = vld [vmem:[%s1504_s6] ss:$0 sm:$0xff] }
  0x51   :  { %1176 = vmatprep.subr.bf16.mxu0 %v1324_v25  ;;  %1190 = vmatprep.mubr.msk.bf16.mxu0 %vm1325_vm0, %v1324_v25 }
  0x52   :  { %1210 = vmatprep.mubr.msk.bf16.mxu1 %vm1325_vm0, %v1324_v25  ;;  %1195 = vmatpush3.bf16.msra.mxu1 %v1291_v33 }
  0x53   :  { %1196 = vmatprep.subr.bf16.mxu1 %v1324_v25 }
  0x54   :  { %1177 = vmatpush3.bf16.msra.mxu0 %v1284_v26 }
  0x55   :  { %1178 = vmatprep.subr.bf16.mxu0 %v1324_v25 }
  0x56   :  { %1197 = vmatpush3.bf16.msra.mxu1 %v1292_v34 }
  0x57   :  { %1198 = vmatprep.subr.bf16.mxu1 %v1324_v25 }
  0x58   :  { %1179 = vmatpush3.bf16.msra.mxu0 %v1285_v27 }
  0x59   :  { %1180 = vmatprep.subr.bf16.mxu0 %v1324_v25 }
  0x5a   :  { %1199 = vmatpush3.bf16.msra.mxu1 %v1293_v35 }
  0x5b   :  { %1200 = vmatprep.subr.bf16.mxu1 %v1324_v25 }
  0x5c   :  { %1181 = vmatpush3.bf16.msra.mxu0 %v1286_v28 }
  0x5d   :  { %1182 = vmatprep.subr.bf16.mxu0 %v1324_v25 }
  0x5e   :  { %1201 = vmatpush3.bf16.msra.mxu1 %v1294_v36 }
  0x5f   :  { %1202 = vmatprep.subr.bf16.mxu1 %v1324_v25 }
  0x60   :  { %1183 = vmatpush3.bf16.msra.mxu0 %v1287_v29 }
  0x61   :  { %1184 = vmatprep.subr.bf16.mxu0 %v1324_v25 }
  0x62   :  { %1203 = vmatpush3.bf16.msra.mxu1 %v1295_v37 }
  0x63   :  { %1204 = vmatprep.subr.bf16.mxu1 %v1324_v25 }
  0x64   :  { %1185 = vmatpush3.bf16.msra.mxu0 %v1288_v30 }
  0x65   :  { %1186 = vmatprep.subr.bf16.mxu0 %v1324_v25 }
  0x66   :  { %1205 = vmatpush3.bf16.msra.mxu1 %v1296_v10 }
  0x67   :  { %1206 = vmatprep.subr.bf16.mxu1 %v1324_v25 }
  0x68   :  { %1187 = vmatpush3.bf16.msra.mxu0 %v1289_v31 }
  0x69   :  { %1188 = vmatprep.subr.bf16.mxu0 %v1324_v25 }
  0x6a   :  { %1207 = vmatpush3.bf16.msra.mxu1 %v1297_v11 }
  0x6b   :  { %1208 = vmatprep.subr.bf16.mxu1 %v1324_v25 }
  0x6c   :  { %1189 = vmatpush3.bf16.msra.mxu0 %v1290_v32 }
  0x6e   :  { %1209 = vmatpush3.bf16.msra.mxu1 %v1298_v12 }
  0xef   :  { %v1084_v38 = vpop.f32.mrf.mxu0 }
  0xf0   :  { %v1106_v39 = vpop.f32.mrf.mxu1 }
  0xf1   :  { %v1085_v40 = vpop.f32.mrf.mxu0 }
  0xf2   :  { %v1107_v41 = vpop.f32.mrf.mxu1  ;;  %v1086_v43 = vadd.f32 %v1085_v40, %v1084_v38 }
  0xf3   :  { %v1087_v42 = vpop.f32.mrf.mxu0  ;;  %v1108_v48 = vadd.f32 %v1107_v41, %v1106_v39 }
  0xf4   :  { %v1109_v44 = vpop.f32.mrf.mxu1  ;;  %v619_v47 = vadd.f32 %v1086_v43, %v985_v45 }
  0xf5   :  { %v1088_v46 = vpop.f32.mrf.mxu0 }
  0xf6   :  { %v1089_v49 = vadd.f32 %v1088_v46, %v1087_v42  ;;  %v1110_v50 = vpop.f32.mrf.mxu1  ;;  %v660_v54 = vadd.f32 %v1108_v48, %v619_v47 }
  0xf7   :  { %v1111_v59 = vadd.f32 %v1110_v50, %v1109_v44 }
  0xf8   :  { %v622_v55 = vadd.f32 %v1089_v49, %v985_v45 }
  0xfa   :  { %v663_v63 = vadd.f32 %v1111_v59, %v622_v55 }
 0x10f   :  { %v1128_v51 = vpop.f32.mrf.mxu0 }
 0x110   :  { %v1150_v52 = vpop.f32.mrf.mxu1 }
 0x111   :  { %v1129_v53 = vpop.f32.mrf.mxu0 }
 0x112   :  { %v1130_v56 = vadd.f32 %v1129_v53, %v1128_v51  ;;  %v1151_v57 = vpop.f32.mrf.mxu1 }
 0x113   :  { %v1131_v58 = vpop.f32.mrf.mxu0  ;;  %v1152_v0 = vadd.f32 %v1151_v57, %v1150_v52 }
 0x114   :  { %v701_v60 = vadd.f32 %v1130_v56, %v660_v54  ;;  %v1153_v61 = vpop.f32.mrf.mxu1 }
 0x115   :  { %v1132_v62 = vpop.f32.mrf.mxu0 }
 0x116   :  { %v1133_v1 = vadd.f32 %v1132_v62, %v1131_v58  ;;  %v1154_v2 = vpop.f32.mrf.mxu1  ;;  %v742_v3 = vadd.f32 %v1152_v0, %v701_v60 }
 0x117   :  { %v1155_v5 = vadd.f32 %v1154_v2, %v1153_v61 }
 0x118   :  { %v704_v4 = vadd.f32 %v1133_v1, %v663_v63  ;;  %v748_v7 = vmax.f32 %v742_v3, 0.0 }
 0x11a   :  { %v745_v6 = vadd.f32 %v1155_v5, %v704_v4 }
 0x11c   :  { %v749_v8 = vmax.f32 %v745_v6, 0.0 }
 0x11e   :  { %v750_v9 = vpack.c.bf16 %v749_v8, %v748_v7 }
 0x120   :  { %1191 = vmatmul.mubr.bf16.vlgmr.msra.gmra.mxu0 %v750_v9 }
 0x1e0   :  { %v856_v14 = vpop.f32.mrf.mxu0 }
 0x1e1   :  { %v857_v16 = vadd.f32 %v1050_v13, %v856_v14 }
 0x1e2   :  { %v1192_v15 = vpop.f32.mrf.mxu0 }
 0x1e3   :  { %v863_v20 = vmax.f32 %v857_v16, 0.0 }
 0x1e4   :  { %v859_v17 = vpop.f32.mrf.mxu0 }
 0x1e5   :  { %v860_v18 = vadd.f32 %v1050_v13, %v859_v17 }
 0x1e6   :  { %v1193_v19 = vpop.f32.mrf.mxu0 }
 0x1e7   :  { %v864_v21 = vmax.f32 %v860_v18, 0.0 }
 0x1e9   :  { %v865_v22 = vpack.c.bf16 %v864_v21, %v863_v20 }
 0x1eb   :  { %1211 = vmatmul.mubr.bf16.vlgmr.msra.gmra.mxu1 %v865_v22 }
 0x2ab   :  { %v971_v24 = vpop.f32.mrf.mxu1 }
 0x2ac   :  { %v972_v25 = vadd.f32 %v1059_v23, %v971_v24 }
 0x2ad   :  { %v1212_v26 = vpop.f32.mrf.mxu1 }
 0x2ae   :  { %978 = vst [vmem:[%s1505_s7] sm:$0xff] %v972_v25 }
 0x2af   :  { %v974_v27 = vpop.f32.mrf.mxu1 }
 0x2b0   :  { %v975_v28 = vadd.f32 %v1059_v23, %v974_v27 }
 0x2b1   :  { %v1213_v29 = vpop.f32.mrf.mxu1 }
 0x2b2   :  { %979 = vst [vmem:[%s1505_s7 + $0x8] sm:$0xff] %v975_v28 }
 0x2b3   :  { %984 = vsyncpa [#allocation3], 1 }

</bundles_post_ra>
